<compile_context>
chip_gen: v6e
topology: v6e:2x2x1
jax: 0.10.0
libtpu: 0.0.40
codegen_flags: <defaults>
</compile_context>

<pallas_src>
import jax
import jax.numpy as jnp
from jax import lax
from jax.experimental import pallas as pl
from jax.experimental.pallas import tpu as pltpu


def _round_up(x, m):
    return ((x + m - 1) // m) * m


def _make_kernel(TS, S_valid, need_mask):
    """Build the dice kernel closed over the static tiling parameters."""

    def kernel(p_ref, t_ref, o_ref, num_acc, den_acc):
        # p_ref/t_ref: (Bt, C, TS) tile of one batch pack.
        # o_ref: (1, Bt, C, 1) per-(batch, channel) dice term (written at last S tile).
        # num_acc/den_acc: (Bt, C, 1) f32 accumulators, persist across S tiles.
        s_idx = pl.program_id(1)
        last = pl.num_programs(1) - 1

        @pl.when(s_idx == 0)
        def _():
            num_acc[...] = jnp.zeros_like(num_acc)
            den_acc[...] = jnp.zeros_like(den_acc)

        # Cast to f32 inside the kernel (inputs may be bf16/int8 -> less HBM traffic).
        p = p_ref[...].astype(jnp.float32)        # (Bt, C, TS)
        t = t_ref[...].astype(jnp.float32)        # (Bt, C, TS)

        # Per-pixel softmax over the channel (sublane) axis. The normalization
        # is hoisted to ONE exact reciprocal per pixel (not per element); exact
        # math is kept to preserve the 1e-5 tolerance.
        m = jnp.max(p, axis=1, keepdims=True)               # (Bt, 1, TS)
        e = jnp.exp(p - m)
        zinv = 1.0 / jnp.sum(e, axis=1, keepdims=True)       # (Bt, 1, TS)
        sm = e * zinv                                         # (Bt, C, TS)

        num_part = sm * t                                     # (Bt, C, TS)
        den_part = sm * sm + t * t                            # (Bt, C, TS)

        def accumulate(n_part, d_part):
            num_acc[...] += jnp.sum(n_part, axis=2, keepdims=True)   # (Bt, C, 1)
            den_acc[...] += jnp.sum(d_part, axis=2, keepdims=True)   # (Bt, C, 1)

        if need_mask:
            # Only the last S tile contains zero-padded columns (pad < 128 <= TS),
            # so the iota/compare/multiply masking is gated to that tile only.
            @pl.when(s_idx != last)
            def _():
                accumulate(num_part, den_part)

            @pl.when(s_idx == last)
            def _():
                col = s_idx * TS + lax.broadcasted_iota(jnp.int32, (1, 1, TS), 2)
                valid = (col < S_valid).astype(jnp.float32)
                accumulate(num_part * valid, den_part * valid)
        else:
            accumulate(num_part, den_part)

        @pl.when(s_idx == last)
        def _():
            smooth = jnp.float32(1.0)
            num = num_acc[...] + smooth                       # (Bt, C, 1)
            den = den_acc[...] + smooth                       # (Bt, C, 1)
            o_ref[...] = (1.0 - num / den)[None, ...].astype(o_ref.dtype)

    return kernel


def dice_loss(predict, target, weights=None):
    """predict, target: [B, C, H, W]. Returns per-batch loss, shape [B]."""
    assert predict.shape == target.shape, "shape mismatch"
    B, C, H, W = predict.shape
    S = H * W

    # Keep native dtype (bf16 / int8 one-hot targets are exact); cast in-kernel.
    p = predict.reshape(B, C, S)
    t = target.reshape(B, C, S)

    # Batch packing: fill sublanes when C < 8, but cap Bt so the "parallel"
    # batch grid axis keeps >= 2 steps (both v7x TensorCores get work).
    if C >= 8:
        Bt = 1
    else:
        Bt = min(max(1, 8 // C), max(1, B // 2))
        while B % Bt:
            Bt -= 1

    # VMEM-capacity-aware tile budget (v5e/v6e: 128 MiB, v7x: 64 MiB).
    try:
        info = pltpu.get_tpu_info()
        vmem_cap = int(getattr(info, "vmem_capacity_bytes", 0)) or 64 * 1024 * 1024
    except Exception:
        vmem_cap = 64 * 1024 * 1024                      # conservative fallback
    vmem_limit = min((vmem_cap * 3) // 4, 100 * 1024 * 1024)
    budget = vmem_limit // 2                             # target for tiles + temps

    # Bytes per spatial column: 2 pipeline buffers per input (native dtype) plus
    # ~10 live f32 temporaries, all at sublane-padded channel width.
    c_pad = _round_up(C, 8)
    in_bytes = 2 * (jnp.dtype(p.dtype).itemsize + jnp.dtype(t.dtype).itemsize)
    per_col = Bt * c_pad * (in_bytes + 10 * 4)
    ts_budget = max(128, (budget // per_col) // 128 * 128)

    # Pad S only to the next multiple of 128 (no pad to a multiple of TS) and
    # pick TS as the largest divisor of the padded extent under the budget.
    S128 = _round_up(S, 128)
    q = S128 // 128
    TS = 128
    for d in range(min(q, ts_budget // 128), 0, -1):
        if q % d == 0:
            TS = 128 * d
            break

    need_mask = S128 != S
    if need_mask:
        pad = S128 - S
        p = jnp.pad(p, ((0, 0), (0, 0), (0, pad)))
        t = jnp.pad(t, ((0, 0), (0, 0), (0, pad)))

    kernel = _make_kernel(TS, S, need_mask)

    # TODO(synk): for C < 8 a fully packed (Bt*C, TS) sublane layout with
    # group-strided softmax reductions would double VPU/EUP occupancy; kept the
    # native (Bt, C, TS) layout here for robust lowering of the channel reduces.
    out = pl.pallas_call(
        kernel,
        out_shape=jax.ShapeDtypeStruct((B // Bt, Bt, C, 1), jnp.float32),
        grid_spec=pltpu.PrefetchScalarGridSpec(
            num_scalar_prefetch=0,
            grid=(B // Bt, S128 // TS),
            in_specs=[
                pl.BlockSpec((Bt, C, TS), lambda b, s: (b, 0, s)),   # predict tile
                pl.BlockSpec((Bt, C, TS), lambda b, s: (b, 0, s)),   # target tile
            ],
            out_specs=pl.BlockSpec((1, Bt, C, 1), lambda b, s: (b, 0, 0, 0)),
            scratch_shapes=[
                pltpu.VMEM((Bt, C, 1), jnp.float32),   # num accumulator
                pltpu.VMEM((Bt, C, 1), jnp.float32),   # den accumulator
            ],
        ),
        compiler_params=pltpu.CompilerParams(
            dimension_semantics=("parallel", "arbitrary"),
            vmem_limit_bytes=int(vmem_limit),
        ),
    )(p, t)

    # Tiny epilogue (B x C elements): weighted mean over channels in plain JAX,
    # so the lane-sparse weights block never enters the kernel's VMEM pipeline.
    dice_bc = out.reshape(B, C)
    if weights is not None:
        dice_bc = dice_bc * jnp.asarray(weights, jnp.float32).reshape(1, C)
    return jnp.sum(dice_bc, axis=1) / jnp.float32(C)


def _reference(predict, target, weights=None):
    B, C, H, W = predict.shape
    p = jax.nn.softmax(predict.astype(jnp.float32), axis=1).reshape(B, C, -1)
    t = target.astype(jnp.float32).reshape(B, C, -1)
    num = jnp.sum(p * t, axis=2) + 1.0
    den = jnp.sum(p * p + t * t, axis=2) + 1.0
    per_c = 1.0 - num / den                      # (B, C)
    if weights is not None:
        per_c = per_c * jnp.asarray(weights, jnp.float32)[None, :]
    return jnp.sum(per_c, axis=1) / C


if __name__ == "__main__":
    key = jax.random.PRNGKey(0)

    # Test 1: B=2, C=4, H=W=16 (S = 256, lane-dense, no padding, Bt capped to 1
    # so the parallel batch axis has 2 grid steps).
    B, C, H, W = 2, 4, 16, 16
    k1, k2, k3 = jax.random.split(key, 3)
    predict = jax.random.normal(k1, (B, C, H, W), dtype=jnp.float32)
    labels = jax.random.randint(k2, (B, H, W), 0, C)
    target = jax.nn.one_hot(labels, C, axis=1).astype(jnp.float32)

    out = jax.block_until_ready(dice_loss(predict, target))      # weights=None
    ref = _reference(predict, target)
    assert out.shape == (B,)
    assert jnp.allclose(out, ref, atol=1e-5, rtol=1e-5), (out, ref)

    # Test 1b: per-channel weights.
    wts = jnp.array([0.5, 1.0, 1.5, 2.0], jnp.float32)
    out_w = jax.block_until_ready(dice_loss(predict, target, weights=wts))
    ref_w = _reference(predict, target, weights=wts)
    assert jnp.allclose(out_w, ref_w, atol=1e-5, rtol=1e-5), (out_w, ref_w)

    # Test 1c: bf16 one-hot target (exact; demonstrates the reduced HBM stream).
    out_b = jax.block_until_ready(dice_loss(predict, target.astype(jnp.bfloat16)))
    assert jnp.allclose(out_b, ref, atol=1e-5, rtol=1e-5), (out_b, ref)

    # Test 2: odd spatial size (S = 100 -> padded to 128, mask gated to the
    # last/only tile), C = 3.
    B2, C2, H2, W2 = 2, 3, 10, 10
    k4, k5, k6 = jax.random.split(k3, 3)
    predict2 = jax.random.normal(k4, (B2, C2, H2, W2), dtype=jnp.float32)
    labels2 = jax.random.randint(k5, (B2, H2, W2), 0, C2)
    target2 = jax.nn.one_hot(labels2, C2, axis=1).astype(jnp.float32)
    out2 = jax.block_until_ready(dice_loss(predict2, target2))
    ref2 = _reference(predict2, target2)
    assert jnp.allclose(out2, ref2, atol=1e-5, rtol=1e-5), (out2, ref2)

    # Test 3: larger batch exercises the Bt=2 batch-packing path + masking
    # (B=8, C=4, S=64 -> padded to 128).
    B3, C3, H3, W3 = 8, 4, 8, 8
    k7, k8 = jax.random.split(k6)
    predict3 = jax.random.normal(k7, (B3, C3, H3, W3), dtype=jnp.float32)
    labels3 = jax.random.randint(k8, (B3, H3, W3), 0, C3)
    target3 = jax.nn.one_hot(labels3, C3, axis=1).astype(jnp.float32)
    out3 = jax.block_until_ready(dice_loss(predict3, target3))
    ref3 = _reference(predict3, target3)
    assert jnp.allclose(out3, ref3, atol=1e-5, rtol=1e-5), (out3, ref3)

    print("KERNEL_OK")
</pallas_src>

<mosaic_0001>
module attributes {stable_mosaic.version = 11 : i64} {
  func.func @kernel(%arg0: i32, %arg1: i32, %arg2: memref<1x4x256xf32, #tpu.memory_space<vmem>>, %arg3: memref<1x4x256xf32, #tpu.memory_space<vmem>>, %arg4: memref<1x1x4x1xf32, #tpu.memory_space<vmem>>, %arg5: memref<1x4x1xf32, #tpu.memory_space<vmem>>, %arg6: memref<1x4x1xf32, #tpu.memory_space<vmem>>) attributes {dimension_semantics = [#tpu.dimension_semantics<parallel>, #tpu.dimension_semantics<arbitrary>], iteration_bounds = array<i64: 2, 1>, scalar_prefetch = 0 : i64, scratch_operands = 2 : i64, tpu.core_type = #tpu.core_type<tc>, window_params = [{transform_indices = @transform_0, window_bounds = array<i64: 1, 4, 256>}, {transform_indices = @transform_1, window_bounds = array<i64: 1, 4, 256>}, {transform_indices = @transform_2, window_bounds = array<i64: 1, 1, 4, 1>}]} {
    %c0_i32 = arith.constant 0 : i32
    %0 = arith.cmpi eq, %arg1, %c0_i32 : i32
    %1 = arith.extui %0 : i1 to i32
    %c0_i32_0 = arith.constant 0 : i32
    %2 = arith.cmpi ne, %1, %c0_i32_0 : i32
    scf.if %2 {
      %cst_24 = arith.constant 0.000000e+00 : f32
      %33 = vector.broadcast %cst_24 : f32 to vector<1x4x1xf32>
      %c0_25 = arith.constant 0 : index
      %c0_26 = arith.constant 0 : index
      %c0_27 = arith.constant 0 : index
      %34 = vector.load %arg5[%c0_25, %c0_26, %c0_27] : memref<1x4x1xf32, #tpu.memory_space<vmem>>, vector<1x4x1xf32>
      tpu.vector_store %arg5[%c0_25, %c0_26, %c0_27], %33 {strides = array<i32>} : memref<1x4x1xf32, #tpu.memory_space<vmem>>, vector<1x4x1xf32>,
      %cst_28 = arith.constant 0.000000e+00 : f32
      %35 = vector.broadcast %cst_28 : f32 to vector<1x4x1xf32>
      %c0_29 = arith.constant 0 : index
      %c0_30 = arith.constant 0 : index
      %c0_31 = arith.constant 0 : index
      %36 = vector.load %arg6[%c0_29, %c0_30, %c0_31] : memref<1x4x1xf32, #tpu.memory_space<vmem>>, vector<1x4x1xf32>
      tpu.vector_store %arg6[%c0_29, %c0_30, %c0_31], %35 {strides = array<i32>} : memref<1x4x1xf32, #tpu.memory_space<vmem>>, vector<1x4x1xf32>,
    } else {
    }
    %c0 = arith.constant 0 : index
    %c0_1 = arith.constant 0 : index
    %c0_2 = arith.constant 0 : index
    %3 = vector.load %arg2[%c0, %c0_1, %c0_2] : memref<1x4x256xf32, #tpu.memory_space<vmem>>, vector<1x4x256xf32>
    %c0_3 = arith.constant 0 : index
    %c0_4 = arith.constant 0 : index
    %c0_5 = arith.constant 0 : index
    %4 = vector.load %arg3[%c0_3, %c0_4, %c0_5] : memref<1x4x256xf32, #tpu.memory_space<vmem>>, vector<1x4x256xf32>
    %cst = arith.constant dense<0xFF800000> : vector<1x256xf32>
    %5 = vector.multi_reduction <maximumf>, %3, %cst [1] : vector<1x4x256xf32> to vector<1x256xf32>
    %6 = vector.shape_cast %5 : vector<1x256xf32> to vector<1x1x256xf32>
    %7 = vector.broadcast %6 : vector<1x1x256xf32> to vector<1x4x256xf32>
    %8 = arith.subf %3, %7 : vector<1x4x256xf32>
    %9 = math.exp %8 : vector<1x4x256xf32>
    %cst_6 = arith.constant dense<0.000000e+00> : vector<1x256xf32>
    %10 = vector.multi_reduction <add>, %9, %cst_6 [1] : vector<1x4x256xf32> to vector<1x256xf32>
    %11 = vector.shape_cast %10 : vector<1x256xf32> to vector<1x1x256xf32>
    %cst_7 = arith.constant 1.000000e+00 : f32
    %12 = vector.broadcast %cst_7 : f32 to vector<1x1x256xf32>
    %13 = arith.divf %12, %11 : vector<1x1x256xf32>
    %14 = vector.broadcast %13 : vector<1x1x256xf32> to vector<1x4x256xf32>
    %15 = arith.mulf %9, %14 : vector<1x4x256xf32>
    %16 = arith.mulf %15, %4 : vector<1x4x256xf32>
    %17 = arith.mulf %15, %15 : vector<1x4x256xf32>
    %18 = arith.mulf %4, %4 : vector<1x4x256xf32>
    %19 = arith.addf %17, %18 : vector<1x4x256xf32>
    %c0_8 = arith.constant 0 : index
    %c0_9 = arith.constant 0 : index
    %c0_10 = arith.constant 0 : index
    %20 = vector.load %arg5[%c0_8, %c0_9, %c0_10] : memref<1x4x1xf32, #tpu.memory_space<vmem>>, vector<1x4x1xf32>
    %cst_11 = arith.constant dense<0.000000e+00> : vector<1x4xf32>
    %21 = vector.multi_reduction <add>, %16, %cst_11 [2] : vector<1x4x256xf32> to vector<1x4xf32>
    %22 = vector.shape_cast %21 : vector<1x4xf32> to vector<1x4x1xf32>
    %23 = arith.addf %20, %22 : vector<1x4x1xf32>
    %c0_12 = arith.constant 0 : index
    %c0_13 = arith.constant 0 : index
    %c0_14 = arith.constant 0 : index
    %24 = vector.load %arg5[%c0_12, %c0_13, %c0_14] : memref<1x4x1xf32, #tpu.memory_space<vmem>>, vector<1x4x1xf32>
    tpu.vector_store %arg5[%c0_12, %c0_13, %c0_14], %23 {strides = array<i32>} : memref<1x4x1xf32, #tpu.memory_space<vmem>>, vector<1x4x1xf32>,
    %c0_15 = arith.constant 0 : index
    %c0_16 = arith.constant 0 : index
    %c0_17 = arith.constant 0 : index
    %25 = vector.load %arg6[%c0_15, %c0_16, %c0_17] : memref<1x4x1xf32, #tpu.memory_space<vmem>>, vector<1x4x1xf32>
    %cst_18 = arith.constant dense<0.000000e+00> : vector<1x4xf32>
    %26 = vector.multi_reduction <add>, %19, %cst_18 [2] : vector<1x4x256xf32> to vector<1x4xf32>
    %27 = vector.shape_cast %26 : vector<1x4xf32> to vector<1x4x1xf32>
    %28 = arith.addf %25, %27 : vector<1x4x1xf32>
    %c0_19 = arith.constant 0 : index
    %c0_20 = arith.constant 0 : index
    %c0_21 = arith.constant 0 : index
    %29 = vector.load %arg6[%c0_19, %c0_20, %c0_21] : memref<1x4x1xf32, #tpu.memory_space<vmem>>, vector<1x4x1xf32>
    tpu.vector_store %arg6[%c0_19, %c0_20, %c0_21], %28 {strides = array<i32>} : memref<1x4x1xf32, #tpu.memory_space<vmem>>, vector<1x4x1xf32>,
    %c0_i32_22 = arith.constant 0 : i32
    %30 = arith.cmpi eq, %arg1, %c0_i32_22 : i32
    %31 = arith.extui %30 : i1 to i32
    %c0_i32_23 = arith.constant 0 : i32
    %32 = arith.cmpi ne, %31, %c0_i32_23 : i32
    scf.if %32 {
      %c0_24 = arith.constant 0 : index
      %c0_25 = arith.constant 0 : index
      %c0_26 = arith.constant 0 : index
      %33 = vector.load %arg5[%c0_24, %c0_25, %c0_26] : memref<1x4x1xf32, #tpu.memory_space<vmem>>, vector<1x4x1xf32>
      %cst_27 = arith.constant 1.000000e+00 : f32
      %34 = vector.broadcast %cst_27 : f32 to vector<1x4x1xf32>
      %35 = arith.addf %33, %34 : vector<1x4x1xf32>
      %c0_28 = arith.constant 0 : index
      %c0_29 = arith.constant 0 : index
      %c0_30 = arith.constant 0 : index
      %36 = vector.load %arg6[%c0_28, %c0_29, %c0_30] : memref<1x4x1xf32, #tpu.memory_space<vmem>>, vector<1x4x1xf32>
      %cst_31 = arith.constant 1.000000e+00 : f32
      %37 = vector.broadcast %cst_31 : f32 to vector<1x4x1xf32>
      %38 = arith.addf %36, %37 : vector<1x4x1xf32>
      %39 = arith.divf %35, %38 : vector<1x4x1xf32>
      %cst_32 = arith.constant 1.000000e+00 : f32
      %40 = vector.broadcast %cst_32 : f32 to vector<1x4x1xf32>
      %41 = arith.subf %40, %39 : vector<1x4x1xf32>
      %42 = vector.shape_cast %41 : vector<1x4x1xf32> to vector<1x1x4x1xf32>
      %c0_33 = arith.constant 0 : index
      %c0_34 = arith.constant 0 : index
      %c0_35 = arith.constant 0 : index
      %c0_36 = arith.constant 0 : index
      %43 = vector.load %arg4[%c0_33, %c0_34, %c0_35, %c0_36] : memref<1x1x4x1xf32, #tpu.memory_space<vmem>>, vector<1x1x4x1xf32>
      tpu.vector_store %arg4[%c0_33, %c0_34, %c0_35, %c0_36], %42 {strides = array<i32>} : memref<1x1x4x1xf32, #tpu.memory_space<vmem>>, vector<1x1x4x1xf32>,
    } else {
    }
    return
  }
  func.func @transform_0(%arg0: i32, %arg1: i32) -> (i32, i32, i32) {
    %c0_i32 = arith.constant 0 : i32
    %c0_i32_0 = arith.constant 0 : i32
    return %arg0, %c0_i32, %arg1 : i32, i32, i32
  }
  func.func @transform_1(%arg0: i32, %arg1: i32) -> (i32, i32, i32) {
    %c0_i32 = arith.constant 0 : i32
    %c0_i32_0 = arith.constant 0 : i32
    return %arg0, %c0_i32, %arg1 : i32, i32, i32
  }
  func.func @transform_2(%arg0: i32, %arg1: i32) -> (i32, i32, i32, i32) {
    %c0_i32 = arith.constant 0 : i32
    %c0_i32_0 = arith.constant 0 : i32
    %c0_i32_1 = arith.constant 0 : i32
    %c0_i32_2 = arith.constant 0 : i32
    return %arg0, %c0_i32, %c0_i32_0, %c0_i32_1 : i32, i32, i32, i32
  }
}

</mosaic_0001>

<bundles_post_ra>
// kernel: tpu_custom_call.1
= control target key start
LH: loop header
LB: loop body
LE: loop exit
PB: predicated region body
PF: predicated region fallthrough
CT: control target
= control target key end

     0   :  { %7 = vsyncpa [#allocation5], 0  ;;  %s780_s0 = inlined_call_operand.hbm [shape: f32[2,4,256], index: 0, kind: input, shape index: {}]   ;;  %s781_s1 = inlined_call_operand.hbm [shape: f32[2,4,256], index: 1, kind: input, shape index: {}]   ;;  %s782_s2 = inlined_call_operand.vmem [shape: f32[2,1,4,1], index: 2, kind: output, shape index: {}]  }
   0x1   :  { %9 = vsyncpa [#allocation5 + $0x1], 0 }
   0x2   :  { %10 = vsyncpa [#allocation7], 0 }
   0x3   :  { %12 = vsyncpa [#allocation7 + $0x1], 0  ;;  %s638_s9 = smov 0   ;;  %s640_s10 = smov 0  }
   0x4   :  { %s642_s11 = smov 0   ;;  %s644_s12 = smov 0  }
   0x5   :  { %s646_s13 = smov 0   ;;  %s648_s14 = smov 0  }
   0x6 LB: > { %s420_s15 = sadd.s32 4294967295, %s618_s14   ;;  %s30_s16 = sadd.s32 1, %s614_s13  ;;  %s618_s14 = sphi %s648_s14, %s18_s14   ;;  %s614_s13 = sphi %s646_s13, %s791_s13   ;;  %s610_s12 = sphi %s644_s12, %s790_s12   ;;  %s606_s11 = sphi %s642_s11, %s789_s11   ;;  %s602_s10 = sphi %s640_s10, %s788_s10   ;;  %s598_s9 = sphi %s638_s9, %s787_s9  }
   0x7   : > { %p32_p0 = scmp.ge.s32.totalorder %s30_s16, 2  ;;  %s39_s17 = sadd.s32 1, %s606_s11 }
   0x8   : > { %p46_p1 = scmp.ne.s32.totalorder %s606_s11, %s602_s10  ;;  %p47_p2 = scmp.eq.s32.totalorder %s618_s14, 0 }
   0x9   : > { %s793_s16 = smov (%p32_p0, %s30_s16), 0  ;;  %p52_p4 = scmp.ne.s32.totalorder %s602_s10, %s598_s9 }
   0xa   : > { %p674_p3 = por %p47_p2, %p46_p1  ;;  %s34_s19 = ssub.s32 %s614_s13, %s793_s16 }
   0xb   : > { %p53_p5 = scmp.eq.s32.totalorder %s420_s15, 0  ;;  %p37_p6 = scmp.eq.s32.totalorder %s34_s19, 0 }
   0xc   : > { %p449_p8 = scmp.lt.s32.totalorder %s618_s14, 2  ;;  %s690_s22 = sand.u32 1, %s606_s11  }
   0xd   : > { %p681_p7 = por %p53_p5, %p52_p4  ;;  %s436_s23 = sshll.u32 %s614_s13, 7 }
   0xe   : > { %s687_s21 = scalar_select %p37_p6, %s606_s11, %s39_s17  }
   0xf   : > { %s424_s24 = sshll.u32 %s690_s22, 3  ;;  %s142_s27 = scalar_lea.hbm %s780_s0, %s436_s23 }
  0x10   : > { %s134_s28 = scalar_lea.vmem [#allocation4], %s424_s24  ;;  %p699_p9 = pnand %p449_p8, %p674_p3 }
  0x11   : > { %s144_s29 = sshll.u32 %s134_s28, 4  ;;  %p430_p10 = scmp.ge.s32.totalorder %s618_s14, 1  ;;  %s145_s29 = int_to_ptr.vmem [resolvable:$true] %s144_s29 }
  0x12   : > { %p170_p11 = scmp.lt.s32.totalorder %s618_s14, 3  ;;  %s131_s3 = scalar_lea.sflag [#allocation5], %s690_s22 }
  0x13   : > { %p510_p12 = pneg %p699_p9  ;;  %s521_s4 = scalar_lea.vmem %s145_s29, 128 }
  0x14   : > { %p522_p13 = scmp.ne.s32.totalorder %s145_s29, %s521_s4  ;;  %s620_s5 = smov [#allocation4]  }
  0x15   : > { %s526_s6 = sshll.u32 %s620_s5, 4  ;;  %s527_s6 = int_to_ptr.vmem [resolvable:$false] %s526_s6 }
  0x16   : > { %p524_p0 = pnand %p522_p13, %p510_p12  ;;  %s528_s7 = scalar_lea.vmem %s527_s6, 256 }
  0x17   : > { %p529_p2 = scmp.lt.s32.totalorder %s145_s29, %s527_s6  ;;  %p530_p3 = scmp.lt.s32.totalorder %s528_s7, %s521_s4 }
  0x18   : > { %p525_p1 = pneg %p524_p0 }
  0x19   : > { %p531_p4 = por %p530_p3, %p529_p2 }
  0x1b   : > { %p532_p5 = pnand %p531_p4, %p525_p1 }
  0x1d   : > { %535 = shalt.err (!%p532_p5)
}
  0x1e   : > { %445 = dma.hbm_to_vmem [thread:$0]  (!%p699_p9), %s142_s27, 128, %s145_s29, %s131_s3  }
  0x1f   : > { %p717_p6 = pnand %p430_p10, %p170_p11  ;;  %s163_s17 = scalar_lea.hbm %s781_s1, %s436_s23 }
  0x20   : > { %s155_s18 = scalar_lea.vmem [#allocation6], %s424_s24  ;;  %s152_s25 = scalar_lea.sflag [#allocation7], %s690_s22 }
  0x21   : > { %s165_s19 = sshll.u32 %s155_s18, 4  ;;  %s621_s27 = smov [#allocation6]   ;;  %s166_s19 = int_to_ptr.vmem [resolvable:$true] %s165_s19 }
  0x22   : > { %s549_s26 = scalar_lea.vmem %s166_s19, 128  ;;  %s554_s28 = sshll.u32 %s621_s27, 4  ;;  %s555_s28 = int_to_ptr.vmem [resolvable:$false] %s554_s28 }
  0x23   : > { %p550_p8 = scmp.ne.s32.totalorder %s166_s19, %s549_s26  ;;  %s556_s29 = scalar_lea.vmem %s555_s28, 256 }
  0x24   : > { %p557_p10 = scmp.lt.s32.totalorder %s166_s19, %s555_s28  ;;  %p558_p11 = scmp.lt.s32.totalorder %s556_s29, %s549_s26 }
  0x25   : > { %p552_p13 = pnand %p550_p8, %p510_p12 }
  0x26   : > { %p559_p1 = por %p558_p11, %p557_p10 }
  0x27   : > { %p553_p0 = pneg %p552_p13 }
  0x29   : > { %p560_p2 = pnand %p559_p1, %p553_p0 }
  0x2b   : > { %563 = shalt.err (!%p560_p2)
}
  0x2c   : > { %448 = dma.hbm_to_vmem [thread:$0]  (!%p699_p9), %s163_s17, 128, %s166_s19, %s152_s25  }
  0x2d   : > { %174 = sbr.rel (%p717_p6) target bundleno = 300 (0x12c), region = 28  ;;  %s176_s22 = sand.u32 (!%p717_p6), 1, %s602_s10  }
  0x2e   : > { %s431_s23 = sshll.u32 (!%p717_p6), %s176_s22, 3  ;;  %s177_s24 = scalar_lea.sflag (!%p717_p6), [#allocation5], %s176_s22 }
  0x2f   : > { %s180_s3 = scalar_lea.vmem (!%p717_p6), [#allocation4], %s431_s23 }
  0x32   : > { %589 = dma.done.wait (%p681_p7), %s177_s24, 128  }
  0x33   : > { %591 = vsyncadd (%p681_p7), %s177_s24, 4294967168  ;;  %s186_s4 = scalar_lea.sflag [#allocation7], %s176_s22  ;;  %s737_s5 = scalar_lea.vmem [#allocation6], %s431_s23 }
  0x34   : > { %593 = dma.done.wait (%p681_p7), %s186_s4, 128  }
  0x35   : > { %595 = vsyncadd (%p681_p7), %s186_s4, 4294967168  ;;  %vm224_vm0 = vcmask 3072   ;;  %v622_v0 = vmov 0.0   ;;  %vm232_vm1 = vcmask 1043456   ;;  %v227_v1 = vld [vmem:[%s180_s3] sm:$0xff]  ;;  %v228_v38 = vld [vmem:[%s737_s5] sm:$0xff] }
  0x36   : > { %226 = vst.msk [vmem:[#allocation3] sm:$0xf] %vm224_vm0, %v622_v0  ;;  %225 = vst.msk [vmem:[#allocation2] sm:$0xf] %vm224_vm0, %v622_v0  ;;  %v230_v2 = vcombine.high %v227_v1, %v227_v1  ;;  %v233_v3 = vsel %vm232_vm1, %v227_v1, -inf  ;;  %v282_v41 = vmul.f32 %v228_v38, %v228_v38  ;;  %p216_p7 = scmp.lt.s32.totalorder %s610_s12, 1 }
  0x37   : > { %v234_v4 = vrot.slane %v233_v3, 4 }
  0x38   : > { %v240_v5 = vsel %vm232_vm1, %v230_v2, -inf  ;;  %s795_s12 = smov (!%p216_p7, %s610_s12), 1 }
  0x39   : > { %v235_v6 = vmax.f32 %v233_v3, %v234_v4  ;;  %v241_v7 = vrot.slane %v240_v5, 4  ;;  %s433_s20 = sshll.u32 %s795_s12, 2 }
  0x3a   : > { %s219_s7 = scalar_lea.vmem %s782_s2, %s433_s20 }
  0x3b   : > { %v236_v8 = vrot.slane %v235_v6, 2  ;;  %v242_v9 = vmax.f32 %v240_v5, %v241_v7 }
  0x3d   : > { %v237_v10 = vmax.f32 %v235_v6, %v236_v8  ;;  %v243_v11 = vrot.slane %v242_v9, 2  ;;  %v296_v53 = vld [vmem:[#allocation3] sm:$0xf]  ;;  %v284_v56 = vld [vmem:[#allocation2] sm:$0xf] }
  0x3f   : > { %v238_v12 = vrot.slane %v237_v10, 1  ;;  %v244_v13 = vmax.f32 %v242_v9, %v243_v11 }
  0x41   : > { %v239_v14 = vmax.f32 %v237_v10, %v238_v12  ;;  %v245_v15 = vrot.slane %v244_v13, 1 }
  0x43   : > { %v246_v16 = vmax.f32 %v244_v13, %v245_v15 }
  0x45   : > { %v249_v17 = vcombine.low %v239_v14, %v246_v16 }
  0x47   : > { %v251_v18 = vsub.f32 %v227_v1, %v249_v17 }
  0x49   : > { %v252_v19 = vmul.f32 1.442695, %v251_v18 }
  0x4b   : > { %500 = vpow2.f32 %v252_v19 }
  0x58   : > { %v501_v20 = vpop.eup %500 }
  0x59   : > { %v255_v21 = vcombine.high %v501_v20, %v501_v20  ;;  %v257_v22 = vsel %vm232_vm1, %v501_v20, 0.0 }
  0x5a   : > { %v258_v23 = vrot.slane %v257_v22, 4 }
  0x5b   : > { %v264_v24 = vsel %vm232_vm1, %v255_v21, 0.0 }
  0x5c   : > { %v259_v25 = vadd.f32 %v258_v23, %v257_v22  ;;  %v265_v26 = vrot.slane %v264_v24, 4 }
  0x5e   : > { %v260_v27 = vrot.slane %v259_v25, 2  ;;  %v266_v28 = vadd.f32 %v265_v26, %v264_v24 }
  0x60   : > { %v261_v29 = vadd.f32 %v260_v27, %v259_v25  ;;  %v267_v30 = vrot.slane %v266_v28, 2 }
  0x62   : > { %v262_v31 = vrot.slane %v261_v29, 1  ;;  %v268_v32 = vadd.f32 %v267_v30, %v266_v28 }
  0x64   : > { %v263_v33 = vadd.f32 %v262_v31, %v261_v29  ;;  %v269_v34 = vrot.slane %v268_v32, 1 }
  0x66   : > { %v270_v35 = vadd.f32 %v269_v34, %v268_v32  ;;  %502 = vrcp.f32 %v263_v33 }
  0x68   : > { %504 = vrcp.f32 %v270_v35 }
  0x73   : > { %v503_v36 = vpop.eup %502 }
  0x75   : > { %v505_v37 = vpop.eup %504 }
  0x76   : > { %v277_v39 = vcombine.low %v503_v36, %v505_v37 }
  0x78   : > { %v279_v40 = vmul.f32 %v501_v20, %v277_v39 }
  0x7a   : > { %v281_v42 = vmul.f32 %v279_v40, %v279_v40  ;;  %v280_v43 = vmul.f32 %v279_v40, %v228_v38 }
  0x7c   : > { %v283_v44 = vadd.f32 %v282_v41, %v281_v42  ;;  %v286_v45 = vcombine.high %v280_v43, %v280_v43  ;;  %v288_v49 = vsel %vm232_vm1, %v280_v43, 0.0 }
  0x7e   : > { %v298_v46 = vcombine.high %v283_v44, %v283_v44  ;;  %v300_v47 = vsel %vm232_vm1, %v283_v44, 0.0  ;;  %v289_v50 = vsel %vm232_vm1, %v286_v45, 0.0 }
  0x7f   : > { %v290_v52 = vadd.f32 %v289_v50, %v288_v49 }
  0x80   : > { %v301_v48 = vsel %vm232_vm1, %v298_v46, 0.0 }
  0x81   : > { %v302_v51 = vadd.f32 %v301_v48, %v300_v47 }
  0x83   : > { %303 = vadd.xlane.f32.xlu0 %v302_v51 }
  0x87   : > { %291 = vadd.xlane.f32.xlu0 %v290_v52 }
 0x10c   : > { %v304_v54 = vpop.xlane.xlu0 %303 }
 0x10d   : > { %v305_v55 = vadd.f32 %v304_v54, %v296_v53 }
 0x10f   : > { %306 = vst.msk [vmem:[#allocation3] sm:$0xf] %vm224_vm0, %v305_v55 }
 0x110   : > { %v292_v57 = vpop.xlane.xlu0 %291 }
 0x111   : > { %v293_v58 = vadd.f32 %v292_v57, %v284_v56 }
 0x113   : > { %295 = vst.msk [vmem:[#allocation2] sm:$0xf] %vm224_vm0, %v293_v58 }
 0x116   : > { %v312_v59 = vld [vmem:[#allocation3] sm:$0xf] }
 0x117   : > { %v313_v60 = vadd.f32 1.0, %v312_v59 }
 0x119   : > { %506 = vrcp.f32 %v313_v60 }
 0x11a   : > { %v310_v61 = vld [vmem:[#allocation2] sm:$0xf] }
 0x11b   : > { %v311_v62 = vadd.f32 1.0, %v310_v61 }
 0x126   : > { %v507_v63 = vpop.eup %506 }
 0x127   : > { %v315_v0 = vmul.f32 %v507_v63, %v311_v62 }
 0x129   : > { %v316_v1 = vsub.f32 1.0, %v315_v0 }
 0x12b   : > { %317 = vst.msk [vmem:[%s219_s7] sm:$0xf] %vm224_vm0, %v316_v1 }
 0x12c PF: > { %s18_s14 = sadd.s32 1, %s618_s14   ;;  %s787_s9 = smov %s602_s10 }
 0x12d   : > { %p15_p9 = scmp.ge.s32.totalorder %s18_s14, 4   ;;  %s788_s10 = smov %s606_s11 }
 0x12e   : > { %s789_s11 = smov %s687_s21  ;;  %s790_s12 = smov %s614_s13 }
 0x12f   : > { %s791_s13 = smov %s793_s16  ;;  %17 = sbr.rel (!%p15_p9) target bundleno = 6 (0x6), region = 89 }
 0x134   :  { %337 = vsyncpa [#allocation5], 1 }
 0x135   :  { %339 = vsyncpa [#allocation5 + $0x1], 1 }
 0x136   :  { %340 = vsyncpa [#allocation7], 1 }
 0x137   :  { %342 = vsyncpa [#allocation7 + $0x1], 1 }

</bundles_post_ra>
